<compile_context>
chip_gen: v6e
topology: v6e:2x2x1
jax: 0.10.0
libtpu: 0.0.40
codegen_flags: <defaults>
</compile_context>

<pallas_src>
import jax
import jax.numpy as jnp
from jax import lax
from jax.experimental import pallas as pl
from jax.experimental.pallas import tpu as pltpu

LEAKY_SLOPE = 0.01        # nn.LeakyReLU() default negative slope
TT_MAX = 512              # output time rows per block

# (in_ch, out_ch, kernel, stride, groups, padding, apply_leaky_relu)
LAYER_CFG = [
    (1,    128,  15, 2, 1,  7,  True),
    (128,  128,  41, 2, 4,  20, True),
    (128,  256,  41, 2, 16, 20, True),
    (256,  512,  41, 4, 16, 20, True),
    (512,  1024, 41, 4, 16, 20, True),
    (1024, 1024, 41, 1, 16, 20, True),
    (1024, 1024, 5,  1, 1,  2,  True),
    (1024, 1,    3,  1, 1,  1,  False),
]


def _cdiv(a, b):
    return -(-a // b)


def _round_up(x, m):
    return _cdiv(x, m) * m


def _dense_n_tile():
    # MXU-native N width: 128 on v5e, 256 on v6e / v7x.
    try:
        kind = jax.devices()[0].device_kind.lower()
    except Exception:
        return 256
    return 128 if "v5" in kind else 256


def _vmem_limit(block_bytes):
    # Footprint-derived scoped-VMEM limit (always < v7x's 64 MiB physical).
    return int(min(48 << 20, max(24 << 20, block_bytes + (16 << 20))))


def _tap_chunks(K, Wc):
    """Split K taps into <=4 chunks (contraction depth >= ~1024 each) so the
    patch-build stores of chunk c+1 can overlap chunk c's MXU matmul."""
    n = max(1, min(4, (K * Wc) // 1024))
    n = min(n, K)
    bounds = [round(c * K / n) for c in range(n + 1)]
    return [(bounds[c], bounds[c + 1]) for c in range(n) if bounds[c + 1] > bounds[c]]


# ----------------------------------------------------------------------------
# kernels
# ----------------------------------------------------------------------------
def _make_im2col_kernel(K, s, Tt, Wc, chunks, apply_lrelu):
    """Grouped layers: per tap-chunk, gather taps into a lane-packed im2col
    patch and run one MXU matmul against a block-diagonal weight slab,
    accumulating into a VMEM f32 scratch."""
    def kernel(x_ref, w_ref, b_ref, o_ref, patch_ref, acc_ref):
        # x_ref: (1, 1, s, Lp_t, Wc)   w_ref: (1, K*Wc, Wout)
        # b_ref: (1, 1, Wout) f32      o_ref: (1, 1, Tt, Wout) f32
        # patch_ref: (Tt, K*Wc) operand dtype   acc_ref: (Tt, Wout) f32
        for ci, (k0, k1) in enumerate(chunks):
            for k in range(k0, k1):          # static tap copies (ref->ref)
                q, r = k // s, k % s
                patch_ref[:, k * Wc:(k + 1) * Wc] = x_ref[0, 0, r, q:q + Tt, :]
            part = jnp.dot(patch_ref[:, k0 * Wc:k1 * Wc],
                           w_ref[0, k0 * Wc:k1 * Wc, :],
                           preferred_element_type=jnp.float32)
            if ci == 0:
                acc_ref[...] = part
            else:
                acc_ref[...] += part
        y = acc_ref[...] + b_ref[0]
        if apply_lrelu:
            y = jnp.maximum(y, LEAKY_SLOPE * y)      # one vmax, no cmp/select
        o_ref[0, 0] = y.astype(o_ref.dtype)
    return kernel


def _make_pertap_kernel(K, Tt, apply_lrelu):
    """Dense layers (groups == 1, stride == 1, Cin >= 128): K accumulated
    matmuls with contraction Cin, accumulated in a VMEM f32 scratch ref."""
    def kernel(x_ref, w_ref, b_ref, o_ref, acc_ref):
        # x_ref: (1, 1, 1, Lp_t, Cin)  w_ref: (K, Cin, tco)
        # b_ref: (1, tco) f32          o_ref: (1, 1, Tt, tco) f32
        # acc_ref: (Tt, tco) f32 scratch
        acc_ref[...] = jnp.dot(x_ref[0, 0, 0, 0:Tt, :], w_ref[0],
                               preferred_element_type=jnp.float32)
        for k in range(1, K):                        # K <= 5
            acc_ref[...] += jnp.dot(x_ref[0, 0, 0, k:k + Tt, :], w_ref[k],
                                    preferred_element_type=jnp.float32)
        y = acc_ref[...] + b_ref[...]
        if apply_lrelu:
            y = jnp.maximum(y, LEAKY_SLOPE * y)
        o_ref[0, 0] = y.astype(o_ref.dtype)
    return kernel


# ----------------------------------------------------------------------------
# one-time parameter preparation (hoisted out of the forward pass)
# ----------------------------------------------------------------------------
def _prepare_layer(w, b, *, kernel_size, stride, padding, groups, act, op_dtype):
    cout, cin_g, K = w.shape
    cin = cin_g * groups
    assert K == kernel_size

    if cin == 1 and groups == 1 and K > 1:
        # Layer 1: hoist the single-channel im2col into the wrapper; the conv
        # becomes a dense (T_out, K) x (K, Cout) matmul (kernel_size = 1).
        inner = _prepare_layer(jnp.transpose(w, (0, 2, 1)), b, kernel_size=1,
                               stride=1, padding=0, groups=1, act=act,
                               op_dtype=op_dtype)
        return dict(mode="cin1", K=K, stride=stride, padding=padding,
                    op_dtype=op_dtype, inner=inner)

    if cin_g >= 128 and groups == 1 and stride == 1:
        # Dense layers 7/8: per-tap accumulated matmuls (contraction = Cin).
        # Pad Cout to 128 (layer 8) so the output store is lane dense.
        cout_pad = cout if cout % 128 == 0 else _round_up(cout, 128)
        tco = min(cout_pad, _dense_n_tile())
        if cout_pad % tco:
            tco = cout_pad
        wk = jnp.transpose(w, (2, 1, 0))                         # (K, Cin, Cout)
        wk = jnp.pad(wk, ((0, 0), (0, 0), (0, cout_pad - cout)))
        bj = jnp.pad(b, (0, cout_pad - cout)).reshape(1, cout_pad)
        return dict(mode="dense", K=K, stride=1, padding=padding, act=act,
                    cin=cin, cout=cout, cout_pad=cout_pad, tco=tco,
                    op_dtype=op_dtype,
                    wk=wk.astype(op_dtype), bj=bj.astype(jnp.float32))

    # Grouped layers 2-6: pack P groups so both pack widths are >= 128 lanes;
    # block-diagonal weight layout -> one lane-dense MXU matmul per block.
    cout_g = cout // groups
    P = min(groups, max(_cdiv(128, cout_g), _cdiv(128, cin_g)))
    while groups % P:
        P -= 1
    Wc, Wout = P * cin_g, P * cout_g
    n_j = groups // P
    Kc = K * Wc
    wt = w.reshape(n_j, P, cout_g, cin_g, K).transpose(0, 4, 1, 3, 2)
    wbd = jnp.einsum("jkpio,pq->jkpiqo", wt, jnp.eye(P, dtype=w.dtype))
    wbd = wbd.reshape(n_j, Kc, Wout)
    bj = b.reshape(n_j, 1, Wout)
    return dict(mode="grouped", K=K, stride=stride, padding=padding, act=act,
                cin=cin, cout=cout, Wc=Wc, Wout=Wout, n_j=n_j, Kc=Kc,
                op_dtype=op_dtype,
                wbd=wbd.astype(op_dtype), bj=bj.astype(jnp.float32))


def prepare_msd_params(all_raw_params, operand_dtype=jnp.bfloat16):
    prepared = []
    for raw in all_raw_params:
        layers = []
        for cfg, (w, b) in zip(LAYER_CFG, raw):
            _ci, _co, k, s, g, p, act = cfg
            layers.append(_prepare_layer(w, b, kernel_size=k, stride=s,
                                         padding=p, groups=g, act=act,
                                         op_dtype=operand_dtype))
        prepared.append(layers)
    return prepared


# ----------------------------------------------------------------------------
# per-layer runner
# ----------------------------------------------------------------------------
def _build_windows(x_btc, *, padding, stride, K, Tt, n_t, dtype):
    """(B, T, Cin) -> (B, n_t, s, Tt + hal, Cin): stride-phase decomposed
    overlapping time windows (hal = (K-1)//s halo rows per tile)."""
    B, T, Cin = x_btc.shape
    s = stride
    hal = (K - 1) // s
    Lext = (n_t + 1) * Tt * s
    assert Lext >= T + padding
    x_pad = jnp.pad(x_btc.astype(dtype),
                    ((0, 0), (padding, Lext - T - padding), (0, 0)))
    xph = x_pad.reshape(B, (n_t + 1) * Tt, s, Cin)   # xph[b,l,r,c] = x_pad[b,l*s+r,c]
    if n_t == 1:
        win = xph[:, :Tt + hal].reshape(B, 1, Tt + hal, s, Cin)
    else:
        main = xph[:, :n_t * Tt].reshape(B, n_t, Tt, s, Cin)
        if hal > 0:
            shift = xph[:, Tt:(n_t + 1) * Tt].reshape(B, n_t, Tt, s, Cin)
            win = jnp.concatenate([main, shift[:, :, :hal]], axis=2)
        else:
            win = main
    return win.transpose(0, 1, 3, 2, 4)              # (B, n_t, s, Tt+hal, Cin)


def _apply_conv_layer(x_btc, prep):
    mode = prep["mode"]
    op_dtype = prep["op_dtype"]

    if mode == "cin1":
        # Layer 1: wrapper-side im2col of the 1-channel waveform, then a
        # kernel_size=1 conv through the grouped Pallas path.
        K, s, p = prep["K"], prep["stride"], prep["padding"]
        B, T, _ = x_btc.shape
        T_out = (T + 2 * p - K) // s + 1
        xp = jnp.pad(x_btc[..., 0].astype(op_dtype), ((0, 0), (p, p)))
        cols = [lax.slice_in_dim(xp, k, k + (T_out - 1) * s + 1, stride=s, axis=1)
                for k in range(K)]
        x_im = jnp.stack(cols, axis=-1)                          # (B, T_out, K)
        return _apply_conv_layer(x_im, prep["inner"])

    K, s, p, act = prep["K"], prep["stride"], prep["padding"], prep["act"]
    B, T, Cin = x_btc.shape
    T_out = (T + 2 * p - K) // s + 1
    hal = (K - 1) // s
    Tt = min(TT_MAX, _round_up(T_out, 16))
    Tt = max(Tt, _round_up(max(hal, _cdiv(K, s), 1), 16))
    n_t = _cdiv(T_out, Tt)
    Lp_t = Tt + hal
    itemsz = jnp.dtype(op_dtype).itemsize

    x_win = _build_windows(x_btc, padding=p, stride=s, K=K, Tt=Tt, n_t=n_t,
                           dtype=op_dtype)

    if mode == "dense":
        tco, cout_pad, cout = prep["tco"], prep["cout_pad"], prep["cout"]
        n_j = cout_pad // tco
        vmem = _vmem_limit(2 * Lp_t * Cin * itemsz + 2 * K * Cin * tco * itemsz
                           + 2 * tco * 4 + 2 * Tt * tco * 4 + Tt * tco * 4)
        out = pl.pallas_call(
            _make_pertap_kernel(K, Tt, act),
            out_shape=jax.ShapeDtypeStruct((B, n_t, Tt, cout_pad), jnp.float32),
            grid_spec=pltpu.PrefetchScalarGridSpec(
                num_scalar_prefetch=0,
                # weight index varies slowest -> weight tile stays VMEM-resident
                grid=(n_j, B, n_t),
                in_specs=[
                    pl.BlockSpec((1, 1, 1, Lp_t, Cin),
                                 lambda j, bb, i: (bb, i, 0, 0, 0)),
                    pl.BlockSpec((K, Cin, tco), lambda j, bb, i: (0, 0, j)),
                    pl.BlockSpec((1, tco),      lambda j, bb, i: (0, j)),
                ],
                out_specs=pl.BlockSpec((1, 1, Tt, tco),
                                       lambda j, bb, i: (bb, i, 0, j)),
                scratch_shapes=[pltpu.VMEM((Tt, tco), jnp.float32)],
            ),
            compiler_params=pltpu.CompilerParams(
                dimension_semantics=("parallel", "parallel", "parallel"),
                vmem_limit_bytes=vmem),
        )(x_win, prep["wk"], prep["bj"])
        return out.reshape(B, n_t * Tt, cout_pad)[:, :T_out, :cout]

    # grouped path
    Wc, Wout, n_j, Kc = prep["Wc"], prep["Wout"], prep["n_j"], prep["Kc"]
    cout = prep["cout"]
    chunks = _tap_chunks(K, Wc)
    vmem = _vmem_limit(2 * s * Lp_t * Wc * itemsz + 2 * Kc * Wout * itemsz
                       + 2 * Wout * 4 + 2 * Tt * Wout * 4
                       + Tt * Kc * itemsz + Tt * Wout * 4)
    out = pl.pallas_call(
        _make_im2col_kernel(K, s, Tt, Wc, chunks, act),
        out_shape=jax.ShapeDtypeStruct((B, n_t, Tt, cout), jnp.float32),
        grid_spec=pltpu.PrefetchScalarGridSpec(
            num_scalar_prefetch=0,
            grid=(n_j, B, n_t),
            in_specs=[
                pl.BlockSpec((1, 1, s, Lp_t, Wc),
                             lambda j, bb, i: (bb, i, 0, 0, j)),
                pl.BlockSpec((1, Kc, Wout), lambda j, bb, i: (j, 0, 0)),
                pl.BlockSpec((1, 1, Wout),  lambda j, bb, i: (j, 0, 0)),
            ],
            out_specs=pl.BlockSpec((1, 1, Tt, Wout),
                                   lambda j, bb, i: (bb, i, 0, j)),
            scratch_shapes=[pltpu.VMEM((Tt, Kc), op_dtype),
                            pltpu.VMEM((Tt, Wout), jnp.float32)],
        ),
        compiler_params=pltpu.CompilerParams(
            dimension_semantics=("parallel", "parallel", "parallel"),
            vmem_limit_bytes=vmem),
    )(x_win, prep["wbd"], prep["bj"])
    return out.reshape(B, n_t * Tt, cout)[:, :T_out, :]


# ----------------------------------------------------------------------------
# model
# ----------------------------------------------------------------------------
def init_params(key):
    """weight_norm(Conv1d) parameters folded into effective (w, bias) per layer."""
    params = []
    for (cin, cout, k, _s, groups, _p, _act) in LAYER_CFG:
        key, k1, k2, k3 = jax.random.split(key, 4)
        cin_g = cin // groups
        v = 0.02 * jax.random.normal(k1, (cout, cin_g, k), jnp.float32)
        g = jax.random.uniform(k2, (cout, 1, 1), jnp.float32, 0.5, 1.5)
        bias = 0.02 * jax.random.normal(k3, (cout,), jnp.float32)
        norm = jnp.sqrt(jnp.sum(v * v, axis=(1, 2), keepdims=True)) + 1e-12
        params.append((g * v / norm, bias))
    return params


def discriminator_s_forward(x_btc, prepared_layers):
    """x_btc: (B, T, 1) channels-last.  Returns (final, fmp[:-1]) in NCW layout."""
    x = x_btc
    fmp = []
    for prep in prepared_layers:
        x = _apply_conv_layer(x, prep)               # f32 layer outputs
        fmp.append(jnp.transpose(x, (0, 2, 1)))      # (B, C, T) like PyTorch
    return fmp[-1], fmp[:-1]


def avg_pool1d(x_btc):
    """AvgPool1d(kernel_size=4, stride=2, padding=2), count_include_pad=True.
    Only ever applied to the 1-channel raw waveform -> plain strided adds
    (a 1-lane Pallas matmul would be pure pallas_call/DMA overhead)."""
    B, T, C = x_btc.shape
    T_out = T // 2 + 1
    xp = jnp.pad(x_btc, ((0, 0), (2, 2), (0, 0)))
    taps = [lax.slice_in_dim(xp, k, k + 2 * (T_out - 1) + 1, stride=2, axis=1)
            for k in range(4)]
    return 0.25 * (taps[0] + taps[1] + taps[2] + taps[3])


def multi_scale_discriminator_forward(x_nct, prepared_all):
    """x_nct: (B, 1, T) like PyTorch.  Returns (outputs, fmp) in NCW layout."""
    temp = jnp.transpose(x_nct, (0, 2, 1))           # channels-last internally
    outputs, fmps = [], []
    for i, prepared_layers in enumerate(prepared_all):
        if i > 0:
            temp = avg_pool1d(temp)
        out, feats = discriminator_s_forward(temp, prepared_layers)
        outputs.append(out)
        fmps.append(feats)
    return outputs, fmps


# ----------------------------------------------------------------------------
# pure-JAX reference (PyTorch semantics)
# ----------------------------------------------------------------------------
def _conv1d_reference(x_nct, w, b, *, stride, padding, groups, apply_lrelu):
    y = lax.conv_general_dilated(
        x_nct, w, window_strides=(stride,), padding=[(padding, padding)],
        dimension_numbers=("NCH", "OIH", "NCH"), feature_group_count=groups)
    y = y + b[None, :, None]
    if apply_lrelu:
        y = jnp.where(y >= 0, y, LEAKY_SLOPE * y)
    return y


def discriminator_s_reference(x_nct, params):
    x = x_nct
    fmp = []
    for cfg, (w, b) in zip(LAYER_CFG, params):
        _ci, _co, _k, s, g, p, act = cfg
        x = _conv1d_reference(x, w, b, stride=s, padding=p, groups=g,
                              apply_lrelu=act)
        fmp.append(x)
    return fmp[-1], fmp[:-1]


def multi_scale_discriminator_reference(x_nct, all_params):
    temp = x_nct
    outputs, fmps = [], []
    for i, params in enumerate(all_params):
        if i > 0:
            C = temp.shape[1]
            pw = jnp.full((C, 1, 4), 0.25, temp.dtype)
            temp = lax.conv_general_dilated(
                temp, pw, window_strides=(2,), padding=[(2, 2)],
                dimension_numbers=("NCH", "OIH", "NCH"), feature_group_count=C)
        out, feats = discriminator_s_reference(temp, params)
        outputs.append(out)
        fmps.append(feats)
    return outputs, fmps


if __name__ == "__main__":
    key = jax.random.PRNGKey(0)
    key, xkey = jax.random.split(key)
    raw_all = [init_params(k) for k in jax.random.split(key, 3)]

    B, T = 2, 4096
    x = jax.random.normal(xkey, (B, 1, T), jnp.float32)   # PyTorch NCW audio input

    def rel_err(a, b):
        a = jnp.asarray(a, jnp.float32)
        b = jnp.asarray(b, jnp.float32)
        return float(jnp.max(jnp.abs(a - b)) / (jnp.max(jnp.abs(b)) + 1e-6))

    ref_outs, ref_fmps = multi_scale_discriminator_reference(x, raw_all)

    # ---- default path: bf16 MXU operands, f32 accumulation / f32 outputs ----
    prep_bf16 = prepare_msd_params(raw_all, operand_dtype=jnp.bfloat16)
    outs, fmps = multi_scale_discriminator_forward(x, prep_bf16)
    outs = [jax.block_until_ready(o) for o in outs]
    fmps = [[jax.block_until_ready(f) for f in fl] for fl in fmps]

    ok = True
    for o, ro in zip(outs, ref_outs):
        ok = ok and (o.shape == ro.shape) and (rel_err(o, ro) < 1e-1)
    for fl, rfl in zip(fmps, ref_fmps):
        for f, rf in zip(fl, rfl):
            ok = ok and (f.shape == rf.shape) and (rel_err(f, rf) < 1e-1)
    assert ok, "bf16-operand Pallas MultiScaleDiscriminator mismatch vs reference"

    # ---- f32 debug path: exact-kernel check on one scale --------------------
    prep_f32 = prepare_msd_params(raw_all[:1], operand_dtype=jnp.float32)
    x_cl = jnp.transpose(x, (0, 2, 1))
    f32_out, f32_feats = discriminator_s_forward(x_cl, prep_f32[0])
    f32_out = jax.block_until_ready(f32_out)
    r_out, r_feats = discriminator_s_reference(x, raw_all[0])
    okf = (f32_out.shape == r_out.shape) and (rel_err(f32_out, r_out) < 2e-3)
    for f, rf in zip(f32_feats, r_feats):
        okf = okf and (f.shape == rf.shape) and (rel_err(f, rf) < 2e-3)
    assert okf, "f32 Pallas DiscriminatorS mismatch vs reference"

    print("KERNEL_OK")
</pallas_src>

<mosaic_0001>
module attributes {stable_mosaic.version = 11 : i64} {
  func.func @kernel(%arg0: i32, %arg1: i32, %arg2: i32, %arg3: memref<1x1x1x512x15xbf16, #tpu.memory_space<vmem>>, %arg4: memref<1x15x128xbf16, #tpu.memory_space<vmem>>, %arg5: memref<1x1x128xf32, #tpu.memory_space<vmem>>, %arg6: memref<1x1x512x128xf32, #tpu.memory_space<vmem>>, %arg7: memref<512x15xbf16, #tpu.memory_space<vmem>>, %arg8: memref<512x128xf32, #tpu.memory_space<vmem>>) attributes {dimension_semantics = [#tpu.dimension_semantics<parallel>, #tpu.dimension_semantics<parallel>, #tpu.dimension_semantics<parallel>], iteration_bounds = array<i64: 1, 2, 4>, scalar_prefetch = 0 : i64, scratch_operands = 2 : i64, tpu.core_type = #tpu.core_type<tc>, window_params = [{transform_indices = @transform_0, window_bounds = array<i64: 1, 1, 1, 512, 15>}, {transform_indices = @transform_1, window_bounds = array<i64: 1, 15, 128>}, {transform_indices = @transform_2, window_bounds = array<i64: 1, 1, 128>}, {transform_indices = @transform_3, window_bounds = array<i64: 1, 1, 512, 128>}]} {
    %c0 = arith.constant 0 : index
    %c0_0 = arith.constant 0 : index
    %c0_1 = arith.constant 0 : index
    %c0_2 = arith.constant 0 : index
    %c0_3 = arith.constant 0 : index
    %0 = vector.load %arg3[%c0, %c0_0, %c0_1, %c0_2, %c0_3] : memref<1x1x1x512x15xbf16, #tpu.memory_space<vmem>>, vector<1x1x1x512x15xbf16>
    %1 = vector.shape_cast %0 : vector<1x1x1x512x15xbf16> to vector<512x15xbf16>
    %c0_4 = arith.constant 0 : index
    %c0_5 = arith.constant 0 : index
    %2 = vector.load %arg7[%c0_4, %c0_5] : memref<512x15xbf16, #tpu.memory_space<vmem>>, vector<512x15xbf16>
    tpu.vector_store %arg7[%c0_4, %c0_5], %1 {strides = array<i32>} : memref<512x15xbf16, #tpu.memory_space<vmem>>, vector<512x15xbf16>,
    %c0_6 = arith.constant 0 : index
    %c0_7 = arith.constant 0 : index
    %3 = vector.load %arg7[%c0_6, %c0_7] : memref<512x15xbf16, #tpu.memory_space<vmem>>, vector<512x15xbf16>
    %c0_8 = arith.constant 0 : index
    %c0_9 = arith.constant 0 : index
    %c0_10 = arith.constant 0 : index
    %4 = vector.load %arg4[%c0_8, %c0_9, %c0_10] : memref<1x15x128xbf16, #tpu.memory_space<vmem>>, vector<1x15x128xbf16>
    %5 = vector.shape_cast %4 : vector<1x15x128xbf16> to vector<15x128xbf16>
    %cst = arith.constant dense<0.000000e+00> : vector<512x128xf32>
    %6 = tpu.matmul %3, %5, %cst {dimension_numbers = #tpu.dot_dimension_numbers<[1], [0], [0], [1], [0, 0, 1, 1], [], []>} : vector<512x15xbf16>, vector<15x128xbf16>, vector<512x128xf32> -> vector<512x128xf32>
    %c0_11 = arith.constant 0 : index
    %c0_12 = arith.constant 0 : index
    %7 = vector.load %arg8[%c0_11, %c0_12] : memref<512x128xf32, #tpu.memory_space<vmem>>, vector<512x128xf32>
    tpu.vector_store %arg8[%c0_11, %c0_12], %6 {strides = array<i32>} : memref<512x128xf32, #tpu.memory_space<vmem>>, vector<512x128xf32>,
    %c0_13 = arith.constant 0 : index
    %c0_14 = arith.constant 0 : index
    %8 = vector.load %arg8[%c0_13, %c0_14] : memref<512x128xf32, #tpu.memory_space<vmem>>, vector<512x128xf32>
    %c0_15 = arith.constant 0 : index
    %c0_16 = arith.constant 0 : index
    %c0_17 = arith.constant 0 : index
    %9 = vector.load %arg5[%c0_15, %c0_16, %c0_17] : memref<1x1x128xf32, #tpu.memory_space<vmem>>, vector<1x1x128xf32>
    %10 = vector.shape_cast %9 : vector<1x1x128xf32> to vector<1x128xf32>
    %11 = vector.broadcast %10 : vector<1x128xf32> to vector<512x128xf32>
    %12 = arith.addf %8, %11 : vector<512x128xf32>
    %cst_18 = arith.constant 0.00999999977 : f32
    %13 = vector.broadcast %cst_18 : f32 to vector<512x128xf32>
    %14 = arith.mulf %13, %12 : vector<512x128xf32>
    %15 = arith.maximumf %12, %14 : vector<512x128xf32>
    %c0_19 = arith.constant 0 : index
    %c0_20 = arith.constant 0 : index
    %c0_21 = arith.constant 0 : index
    %c0_22 = arith.constant 0 : index
    %16 = vector.load %arg6[%c0_19, %c0_20, %c0_21, %c0_22] : memref<1x1x512x128xf32, #tpu.memory_space<vmem>>, vector<1x1x512x128xf32>
    %17 = vector.shape_cast %16 : vector<1x1x512x128xf32> to vector<512x128xf32>
    %18 = vector.shape_cast %15 : vector<512x128xf32> to vector<1x1x512x128xf32>
    tpu.vector_store %arg6[%c0_19, %c0_20, %c0_21, %c0_22], %18 {strides = array<i32>} : memref<1x1x512x128xf32, #tpu.memory_space<vmem>>, vector<1x1x512x128xf32>,
    return
  }
  func.func @transform_0(%arg0: i32, %arg1: i32, %arg2: i32) -> (i32, i32, i32, i32, i32) {
    %c0_i32 = arith.constant 0 : i32
    %c0_i32_0 = arith.constant 0 : i32
    %c0_i32_1 = arith.constant 0 : i32
    return %arg1, %arg2, %c0_i32, %c0_i32_0, %arg0 : i32, i32, i32, i32, i32
  }
  func.func @transform_1(%arg0: i32, %arg1: i32, %arg2: i32) -> (i32, i32, i32) {
    %c0_i32 = arith.constant 0 : i32
    %c0_i32_0 = arith.constant 0 : i32
    %c0_i32_1 = arith.constant 0 : i32
    return %arg0, %c0_i32, %c0_i32_0 : i32, i32, i32
  }
  func.func @transform_2(%arg0: i32, %arg1: i32, %arg2: i32) -> (i32, i32, i32) {
    %c0_i32 = arith.constant 0 : i32
    %c0_i32_0 = arith.constant 0 : i32
    %c0_i32_1 = arith.constant 0 : i32
    return %arg0, %c0_i32, %c0_i32_0 : i32, i32, i32
  }
  func.func @transform_3(%arg0: i32, %arg1: i32, %arg2: i32) -> (i32, i32, i32, i32) {
    %c0_i32 = arith.constant 0 : i32
    %c0_i32_0 = arith.constant 0 : i32
    return %arg1, %arg2, %c0_i32, %arg0 : i32, i32, i32, i32
  }
}

</mosaic_0001>

<bundles_post_ra>
// kernel: tpu_custom_call.1
= control target key start
LH: loop header
LB: loop body
LE: loop exit
PB: predicated region body
PF: predicated region fallthrough
CT: control target
= control target key end

     0   :  { %8 = vsyncpa [#allocation5], 0  ;;  %s2520_s0 = inlined_call_operand.vmem [shape: bf16[2,4,1,512,15], index: 0, kind: input, shape index: {}]   ;;  %s2521_s1 = inlined_call_operand.hbm [shape: bf16[1,15,128], index: 1, kind: input, shape index: {}]   ;;  %s2522_s2 = inlined_call_operand.hbm [shape: f32[1,1,128], index: 2, kind: input, shape index: {}]   ;;  %s2523_s3 = inlined_call_operand.hbm [shape: f32[2,4,512,128], index: 3, kind: output, shape index: {}]  }
   0x1   :  { %9 = vsyncpa [#allocation8], 0 }
   0x2   :  { %10 = vsyncpa [#allocation6], 0 }
   0x3   :  { %12 = vsyncpa [#allocation6 + $0x1], 0  ;;  %s2038_s12 = smov 0   ;;  %s2040_s13 = smov 0  }
   0x4   :  { %s2042_s14 = smov 0   ;;  %s2044_s15 = smov 0  }
   0x5   :  { %s2046_s16 = smov 0   ;;  %s2048_s17 = smov 0  }
   0x6   :  { %s2050_s18 = smov 0   ;;  %s2052_s19 = smov 0  }
   0x7 LB: > { %s1540_s20 = sadd.s32 4294967295, %s2008_s19   ;;  %s1541_s21 = sadd.s32 4294967294, %s2008_s19   ;;  %s2008_s19 = sphi %s2052_s19, %s18_s19   ;;  %s2004_s18 = sphi %s2050_s18, %s2535_s18   ;;  %s2000_s17 = sphi %s2048_s17, %s2534_s17   ;;  %s1996_s16 = sphi %s2046_s16, %s2533_s16   ;;  %s1992_s15 = sphi %s2044_s15, %s2532_s15   ;;  %s1988_s14 = sphi %s2042_s14, %s2531_s14   ;;  %s1984_s13 = sphi %s2040_s13, %s2530_s13   ;;  %s1980_s12 = sphi %s2038_s12, %s2529_s12  }
   0x8   : > { %s30_s22 = sadd.s32 1, %s2000_s17  ;;  %s33_s23 = sadd.s32 1, %s2004_s18 }
   0x9   : > { %p31_p0 = scmp.ge.s32.totalorder %s30_s22, 4  ;;  %s130_s24 = sadd.s32 1, %s1988_s14 }
   0xa   : > { %p140_p1 = scmp.ne.s32.totalorder %s1988_s14, %s1984_s13  ;;  %p141_p2 = scmp.eq.s32.totalorder %s1540_s20, 7 }
   0xb   : > { %s2537_s22 = smov (%p31_p0, %s30_s22), 0  ;;  %s2539_s23 = smov (!%p31_p0, %s33_s23), %s2004_s18 }
   0xc   : > { %s124_s25 = ssub.s32 %s2000_s17, %s2537_s22  ;;  %p2090_p3 = por %p141_p2, %p140_p1 }
   0xd   : > { %p35_p4 = scmp.ge.s32.totalorder %s2539_s23, 2  ;;  %p146_p5 = scmp.ne.s32.totalorder %s1984_s13, %s1980_s12 }
   0xe   : > { %p147_p6 = scmp.eq.s32.totalorder %s1541_s21, 7  ;;  %p1542_p7 = scmp.ge.s32.totalorder %s2008_s19, 1 }
   0xf   : > { %s2541_s23 = smov (%p35_p4, %s2539_s23), 0  ;;  %p154_p9 = scmp.lt.s32.totalorder %s2008_s19, 9 }
  0x10   : > { %p2099_p8 = por %p147_p6, %p146_p5  ;;  %s123_s28 = ssub.s32 %s2004_s18, %s2541_s23 }
  0x11   : > { %s125_s29 = sor.u32 %s124_s25, %s123_s28  ;;  %p2106_p10 = pnand %p1542_p7, %p154_p9 }
  0x12   : > { %p128_p11 = scmp.eq.s32.totalorder %s125_s29, 0  ;;  %p2110_p12 = scmp.eq.s32.totalorder %s1540_s20, 0 }
  0x13   : > { %p1736_p13 = pneg %p2106_p10  ;;  %s2010_s6 = smov [#allocation4]  }
  0x14   : > { %s2117_s5 = scalar_select %p128_p11, %s1988_s14, %s130_s24  }
  0x15   : > { %s169_s7 = sshll.u32 %s2010_s6, 4  ;;  %p2121_p0 = pnand %p2110_p12, %p1736_p13  ;;  %s170_s7 = int_to_ptr.vmem [resolvable:$true] %s169_s7 }
  0x16   : > { %s1867_s9 = scalar_lea.vmem %s170_s7, 128  ;;  %p1875_p6 = scmp.lt.s32.totalorder %s170_s7, %s170_s7 }
  0x17   : > { %p1858_p1 = pneg %p2121_p0  ;;  %p1868_p2 = scmp.ne.s32.totalorder %s170_s7, %s1867_s9 }
  0x18   : > { %p1876_p7 = scmp.lt.s32.totalorder %s1867_s9, %s1867_s9 }
  0x19   : > { %p1870_p4 = pnand %p1868_p2, %p1858_p1 }
  0x1a   : > { %p1877_p9 = por %p1876_p7, %p1875_p6 }
  0x1b   : > { %p1871_p5 = pneg %p1870_p4 }
  0x1d   : > { %p1878_p11 = pnand %p1877_p9, %p1871_p5 }
  0x1f   : > { %1881 = shalt.err (!%p1878_p11)
}
  0x20   : > { %s2011_s10 = smov 64   ;;  %s2012_s11 = smov 4  }
  0x21   : > { %1739 = dma.hbm_to_vmem [thread:$0]  (!%p2121_p0), %s2521_s1, 128, %s170_s7, [#allocation5], %s2011_s10, %s2011_s10, %s2012_s11  }
  0x22   : > { %s2013_s24 = smov [#allocation7]  }
  0x23   : > { %s185_s25 = sshll.u32 %s2013_s24, 4  ;;  %s186_s25 = int_to_ptr.vmem [resolvable:$true] %s185_s25 }
  0x24   : > { %s1893_s28 = scalar_lea.vmem %s186_s25, 16  ;;  %s1900_s29 = scalar_lea.vmem %s186_s25, 32 }
  0x25   : > { %p1894_p13 = scmp.ne.s32.totalorder %s186_s25, %s1893_s28  ;;  %p1901_p5 = scmp.lt.s32.totalorder %s186_s25, %s186_s25 }
  0x26   : > { %p1902_p6 = scmp.lt.s32.totalorder %s1900_s29, %s1893_s28 }
  0x27   : > { %p1896_p2 = pnand %p1894_p13, %p1858_p1 }
  0x28   : > { %p1903_p7 = por %p1902_p6, %p1901_p5 }
  0x29   : > { %p1897_p4 = pneg %p1896_p2 }
  0x2b   : > { %p1904_p9 = pnand %p1903_p7, %p1897_p4 }
  0x2d   : > { %1907 = shalt.err (!%p1904_p9)
}
  0x2e   : > { %1742 = dma.hbm_to_vmem [thread:$0]  (!%p2121_p0), %s2522_s2, 16, %s186_s25, [#allocation8]  }
  0x2f   : > { %213 = sbr.rel (%p2106_p10) target bundleno = 357 (0x165), region = 32 }
  0x34   : > { %1967 = dma.done.wait (%p2110_p12), [#allocation5], 128  }
  0x35   : > { %1969 = vsyncadd (%p2110_p12), [#allocation5], 4294967168 }
  0x36   : > { %1971 = dma.done.wait (%p2110_p12), [#allocation8], 16  }
  0x37   : > { %1973 = vsyncadd (%p2110_p12), [#allocation8], 4294967280  ;;  %vm718_vm0 = vcmask 1046528   ;;  %p248_p0 = scmp.lt.s32.totalorder %s1996_s16, 1  ;;  %p250_p1 = scmp.lt.s32.totalorder %s1992_s15, 3  ;;  %vm719_vm1 = vcmask 1047552  }
  0x38   : > { %v2014_v0 = vmov 65535   ;;  %vm325_vm2 = vcmask 117760   ;;  %v1823_v3 = vld [vmem:[#allocation4] sm:$0xff]   ;;  %vm621_vm3 = vcmask 121856   ;;  %s245_s25 = sand.u32 1, %s1984_s13   ;;  %s1620_s6 = sshll.u32 %s1992_s15, 6 }
  0x39   : > { %s249_s30 = scalar_select %p248_p0, %s1996_s16, 1  ;;  %v720_v1 = vsel %vm718_vm0, 4294967295, %v2014_v0 }
  0x3a   : > { %s251_s7 = scalar_select %p250_p1, %s1992_s15, 3  ;;  %v721_v2 = vsel %vm719_vm1, %v720_v1, 0 }
  0x3b   : > { %s1551_s8 = sshll.u32 %s249_s30, 8  ;;  %v723_v4 = vand.u32 %v1823_v3, %v721_v2  ;;  %s1549_s28 = sshll.u32 %s245_s25, 9 }
  0x3c   : > { %s1550_s10 = sshll.u32 %s251_s7, 6  ;;  %s2333_s29 = scalar_lea.vmem [#allocation9], %s1549_s28 }
  0x3d   : > { %s257_s11 = sadd.s32 %s1551_s8, %s1550_s10  ;;  %1658 = vmatprep.subr.bf16.mxu0 %v723_v4  ;;  %1724 = vmatprep.subr.bf16.mxu1 %v723_v4  ;;  %s1621_s9 = sshll.u32 %s1996_s16, 8 }
  0x3e   : > { %s1552_s4 = sshll.u32 %s257_s11, 2  ;;  %1659 = vmatpush3.bf16.msra.mxu0 %v723_v4  ;;  %1725 = vmatpush3.bf16.msra.mxu1 %v723_v4  ;;  %s1419_s15 = sadd.s32 %s1621_s9, %s1620_s6 }
  0x3f   : > { %s2160_s24 = scalar_lea.vmem %s2520_s0, %s1552_s4  ;;  %s1622_s16 = sshll.u32 %s1419_s15, 7 }
  0x40   : > { %v261_v5 = vld [vmem:[%s2160_s24] sm:$0xf]  ;;  %v262_v6 = vld [vmem:[%s2160_s24 + $0x4] sm:$0xf]  ;;  %v263_v9 = vld [vmem:[%s2160_s24 + $0x8] sm:$0xf]  ;;  %s2460_s10 = scalar_lea.hbm %s2523_s3, %s1622_s16 }
  0x41   : > { %v293_v7 = vld [vmem:[%s2160_s24 + $0x80] sm:$0xf]  ;;  %326 = vst.msk [vmem:[#allocation2] sm:$0xf] %vm325_vm2, %v261_v5  ;;  %327 = vst.msk [vmem:[#allocation2 + $0x4] sm:$0xf] %vm325_vm2, %v262_v6 }
  0x42   : > { %v294_v8 = vld [vmem:[%s2160_s24 + $0x84] sm:$0xf]  ;;  %358 = vst.msk [vmem:[#allocation2 + $0x80] sm:$0xf] %vm325_vm2, %v293_v7  ;;  %v264_v10 = vld [vmem:[%s2160_s24 + $0xc] sm:$0xf] }
  0x43   : > { %359 = vst.msk [vmem:[#allocation2 + $0x84] sm:$0xf] %vm325_vm2, %v294_v8  ;;  %328 = vst.msk [vmem:[#allocation2 + $0x8] sm:$0xf] %vm325_vm2, %v263_v9  ;;  %v295_v11 = vld [vmem:[%s2160_s24 + $0x88] sm:$0xf] }
  0x44   : > { %329 = vst.msk [vmem:[#allocation2 + $0xc] sm:$0xf] %vm325_vm2, %v264_v10  ;;  %v296_v12 = vld [vmem:[%s2160_s24 + $0x8c] sm:$0xf]  ;;  %v265_v13 = vld [vmem:[%s2160_s24 + $0x10] sm:$0xf] }
  0x45   : > { %360 = vst.msk [vmem:[#allocation2 + $0x88] sm:$0xf] %vm325_vm2, %v295_v11  ;;  %361 = vst.msk [vmem:[#allocation2 + $0x8c] sm:$0xf] %vm325_vm2, %v296_v12  ;;  %v266_v14 = vld [vmem:[%s2160_s24 + $0x14] sm:$0xf] }
  0x46   : > { %330 = vst.msk [vmem:[#allocation2 + $0x10] sm:$0xf] %vm325_vm2, %v265_v13  ;;  %v297_v15 = vld [vmem:[%s2160_s24 + $0x90] sm:$0xf]  ;;  %v298_v16 = vld [vmem:[%s2160_s24 + $0x94] sm:$0xf] }
  0x47   : > { %331 = vst.msk [vmem:[#allocation2 + $0x14] sm:$0xf] %vm325_vm2, %v266_v14  ;;  %362 = vst.msk [vmem:[#allocation2 + $0x90] sm:$0xf] %vm325_vm2, %v297_v15  ;;  %v267_v17 = vld [vmem:[%s2160_s24 + $0x18] sm:$0xf] }
  0x48   : > { %363 = vst.msk [vmem:[#allocation2 + $0x94] sm:$0xf] %vm325_vm2, %v298_v16  ;;  %v268_v18 = vld [vmem:[%s2160_s24 + $0x1c] sm:$0xf]  ;;  %v299_v19 = vld [vmem:[%s2160_s24 + $0x98] sm:$0xf] }
  0x49   : > { %332 = vst.msk [vmem:[#allocation2 + $0x18] sm:$0xf] %vm325_vm2, %v267_v17  ;;  %333 = vst.msk [vmem:[#allocation2 + $0x1c] sm:$0xf] %vm325_vm2, %v268_v18  ;;  %v300_v20 = vld [vmem:[%s2160_s24 + $0x9c] sm:$0xf] }
  0x4a   : > { %364 = vst.msk [vmem:[#allocation2 + $0x98] sm:$0xf] %vm325_vm2, %v299_v19  ;;  %v269_v21 = vld [vmem:[%s2160_s24 + $0x20] sm:$0xf]  ;;  %v270_v22 = vld [vmem:[%s2160_s24 + $0x24] sm:$0xf] }
  0x4b   : > { %365 = vst.msk [vmem:[#allocation2 + $0x9c] sm:$0xf] %vm325_vm2, %v300_v20  ;;  %334 = vst.msk [vmem:[#allocation2 + $0x20] sm:$0xf] %vm325_vm2, %v269_v21  ;;  %v301_v23 = vld [vmem:[%s2160_s24 + $0xa0] sm:$0xf] }
  0x4c   : > { %335 = vst.msk [vmem:[#allocation2 + $0x24] sm:$0xf] %vm325_vm2, %v270_v22  ;;  %v302_v24 = vld [vmem:[%s2160_s24 + $0xa4] sm:$0xf]  ;;  %v271_v25 = vld [vmem:[%s2160_s24 + $0x28] sm:$0xf] }
  0x4d   : > { %366 = vst.msk [vmem:[#allocation2 + $0xa0] sm:$0xf] %vm325_vm2, %v301_v23  ;;  %367 = vst.msk [vmem:[#allocation2 + $0xa4] sm:$0xf] %vm325_vm2, %v302_v24  ;;  %v272_v26 = vld [vmem:[%s2160_s24 + $0x2c] sm:$0xf] }
  0x4e   : > { %336 = vst.msk [vmem:[#allocation2 + $0x28] sm:$0xf] %vm325_vm2, %v271_v25  ;;  %v303_v27 = vld [vmem:[%s2160_s24 + $0xa8] sm:$0xf]  ;;  %v304_v28 = vld [vmem:[%s2160_s24 + $0xac] sm:$0xf] }
  0x4f   : > { %v1824_v29 = vld [vmem:[#allocation2] sm:$0xff]   ;;  %337 = vst.msk [vmem:[#allocation2 + $0x2c] sm:$0xf] %vm325_vm2, %v272_v26  ;;  %368 = vst.msk [vmem:[#allocation2 + $0xa8] sm:$0xf] %vm325_vm2, %v303_v27  ;;  %v1826_v31 = vld [vmem:[#allocation2 + $0x8] sm:$0xff]  }
  0x50   : > { %369 = vst.msk [vmem:[#allocation2 + $0xac] sm:$0xf] %vm325_vm2, %v304_v28  ;;  %v1825_v30 = vld [vmem:[#allocation2 + $0x80] sm:$0xff]   ;;  %1660 = vmatprep.mubr.msk.bf16.mxu0 %vm621_vm3, %v1824_v29  ;;  %v1827_v32 = vld [vmem:[#allocation2 + $0x88] sm:$0xff]   ;;  %v1828_v33 = vld [vmem:[#allocation2 + $0x10] sm:$0xff]   ;;  %s1422_s30 = sshll.u32 %s2333_s29, 4  ;;  %s2462_s30 = int_to_ptr.vmem [resolvable:$true] %s1422_s30 }
  0x51   : > { %1692 = vmatprep.mubr.msk.bf16.mxu1 %vm621_vm3, %v1825_v30  ;;  %1661 = vmatmul.mubr.msk.bf16.vlgmr.msra.gmra.mxu0 %vm621_vm3, %v1826_v31  ;;  %v1829_v34 = vld [vmem:[#allocation2 + $0x90] sm:$0xff]   ;;  %v1830_v35 = vld [vmem:[#allocation2 + $0x18] sm:$0xff]   ;;  %v277_v48 = vld [vmem:[%s2160_s24 + $0x40] sm:$0xf]  ;;  %s2469_s11 = scalar_lea.sflag [#allocation6], %s245_s25  ;;  %s1908_s4 = scalar_lea.vmem %s2462_s30, 8192 }
  0x52   : > { %1693 = vmatmul.mubr.msk.bf16.vlgmr.msra.gmra.mxu1 %vm621_vm3, %v1827_v32  ;;  %1664 = vmatprep.mubr.msk.bf16.mxu0 %vm621_vm3, %v1828_v33  ;;  %v1831_v36 = vld [vmem:[#allocation2 + $0x98] sm:$0xff]   ;;  %v273_v39 = vld [vmem:[%s2160_s24 + $0x30] sm:$0xf]  ;;  %v274_v40 = vld [vmem:[%s2160_s24 + $0x34] sm:$0xf]  ;;  %p1909_p10 = scmp.ne.s32.totalorder %s2462_s30, %s1908_s4  ;;  %s2015_s20 = smov [#allocation9]  }
  0x53   : > { %1696 = vmatprep.mubr.msk.bf16.mxu1 %vm621_vm3, %v1829_v34  ;;  %v1832_v37 = vld [vmem:[#allocation2 + $0x20] sm:$0xff]   ;;  %v305_v41 = vld [vmem:[%s2160_s24 + $0xb0] sm:$0xf]  ;;  %338 = vst.msk [vmem:[#allocation2 + $0x30] sm:$0xf] %vm325_vm2, %v273_v39  ;;  %s1912_s21 = sshll.u32 %s2015_s20, 4  ;;  %s1913_s21 = int_to_ptr.vmem [resolvable:$false] %s1912_s21 }
  0x54   : > { %v1833_v38 = vld [vmem:[#allocation2 + $0xa0] sm:$0xff]   ;;  %339 = vst.msk [vmem:[#allocation2 + $0x34] sm:$0xf] %vm325_vm2, %v274_v40  ;;  %v306_v42 = vld [vmem:[%s2160_s24 + $0xb4] sm:$0xf]  ;;  %p1910_p12 = pnand %p1909_p10, %p2090_p3  ;;  %p1915_p13 = scmp.lt.s32.totalorder %s2462_s30, %s1913_s21 }
  0x55   : > { %370 = vst.msk [vmem:[#allocation2 + $0xb0] sm:$0xf] %vm325_vm2, %v305_v41  ;;  %v275_v43 = vld [vmem:[%s2160_s24 + $0x38] sm:$0xf]  ;;  %v276_v44 = vld [vmem:[%s2160_s24 + $0x3c] sm:$0xf] }
  0x56   : > { %v1834_v45 = vld [vmem:[#allocation2 + $0x28] sm:$0xff]   ;;  %371 = vst.msk [vmem:[#allocation2 + $0xb4] sm:$0xf] %vm325_vm2, %v306_v42  ;;  %340 = vst.msk [vmem:[#allocation2 + $0x38] sm:$0xf] %vm325_vm2, %v275_v43  ;;  %p1911_p11 = pneg %p1910_p12 }
  0x57   : > { %341 = vst.msk [vmem:[#allocation2 + $0x3c] sm:$0xf] %vm325_vm2, %v276_v44  ;;  %v307_v46 = vld [vmem:[%s2160_s24 + $0xb8] sm:$0xf]  ;;  %v308_v47 = vld [vmem:[%s2160_s24 + $0xbc] sm:$0xf] }
  0x58   : > { %v1835_v49 = vld [vmem:[#allocation2 + $0xa8] sm:$0xff]   ;;  %372 = vst.msk [vmem:[#allocation2 + $0xb8] sm:$0xf] %vm325_vm2, %v307_v46  ;;  %373 = vst.msk [vmem:[#allocation2 + $0xbc] sm:$0xf] %vm325_vm2, %v308_v47 }
  0x59   : > { %1665 = vmatmul.mubr.msk.bf16.gmra.mxu0 %vm621_vm3, %v1830_v35  ;;  %v278_v50 = vld [vmem:[%s2160_s24 + $0x44] sm:$0xf]  ;;  %342 = vst.msk [vmem:[#allocation2 + $0x40] sm:$0xf] %vm325_vm2, %v277_v48  ;;  %v309_v51 = vld [vmem:[%s2160_s24 + $0xc0] sm:$0xf] }
  0x5a   : > { %1697 = vmatmul.mubr.msk.bf16.gmra.mxu1 %vm621_vm3, %v1831_v36  ;;  %1668 = vmatprep.mubr.msk.bf16.mxu0 %vm621_vm3, %v1832_v37  ;;  %v310_v52 = vld [vmem:[%s2160_s24 + $0xc4] sm:$0xf]  ;;  %343 = vst.msk [vmem:[#allocation2 + $0x44] sm:$0xf] %vm325_vm2, %v278_v50  ;;  %374 = vst.msk [vmem:[#allocation2 + $0xc0] sm:$0xf] %vm325_vm2, %v309_v51 }
  0x5b   : > { %1700 = vmatprep.mubr.msk.bf16.mxu1 %vm621_vm3, %v1833_v38  ;;  %375 = vst.msk [vmem:[#allocation2 + $0xc4] sm:$0xf] %vm325_vm2, %v310_v52  ;;  %v279_v53 = vld [vmem:[%s2160_s24 + $0x48] sm:$0xf]  ;;  %v280_v54 = vld [vmem:[%s2160_s24 + $0x4c] sm:$0xf] }
  0x5c   : > { %v311_v55 = vld [vmem:[%s2160_s24 + $0xc8] sm:$0xf]  ;;  %344 = vst.msk [vmem:[#allocation2 + $0x48] sm:$0xf] %vm325_vm2, %v279_v53  ;;  %345 = vst.msk [vmem:[#allocation2 + $0x4c] sm:$0xf] %vm325_vm2, %v280_v54 }
  0x5d   : > { %v312_v56 = vld [vmem:[%s2160_s24 + $0xcc] sm:$0xf]  ;;  %376 = vst.msk [vmem:[#allocation2 + $0xc8] sm:$0xf] %vm325_vm2, %v311_v55  ;;  %v281_v57 = vld [vmem:[%s2160_s24 + $0x50] sm:$0xf] }
  0x5e   : > { %v282_v58 = vld [vmem:[%s2160_s24 + $0x54] sm:$0xf]  ;;  %377 = vst.msk [vmem:[#allocation2 + $0xcc] sm:$0xf] %vm325_vm2, %v312_v56  ;;  %346 = vst.msk [vmem:[#allocation2 + $0x50] sm:$0xf] %vm325_vm2, %v281_v57 }
  0x5f   : > { %347 = vst.msk [vmem:[#allocation2 + $0x54] sm:$0xf] %vm325_vm2, %v282_v58  ;;  %v313_v59 = vld [vmem:[%s2160_s24 + $0xd0] sm:$0xf]  ;;  %v314_v60 = vld [vmem:[%s2160_s24 + $0xd4] sm:$0xf] }
  0x60   : > { %v283_v61 = vld [vmem:[%s2160_s24 + $0x58] sm:$0xf]  ;;  %378 = vst.msk [vmem:[#allocation2 + $0xd0] sm:$0xf] %vm325_vm2, %v313_v59  ;;  %379 = vst.msk [vmem:[#allocation2 + $0xd4] sm:$0xf] %vm325_vm2, %v314_v60 }
  0x61   : > { %v284_v62 = vld [vmem:[%s2160_s24 + $0x5c] sm:$0xf]  ;;  %348 = vst.msk [vmem:[#allocation2 + $0x58] sm:$0xf] %vm325_vm2, %v283_v61  ;;  %v315_v63 = vld [vmem:[%s2160_s24 + $0xd8] sm:$0xf]  ;;  %1669 = vmatmul.mubr.msk.bf16.gmra.mxu0 %vm621_vm3, %v1834_v45 }
  0x62   : > { %v316_v0 = vld [vmem:[%s2160_s24 + $0xdc] sm:$0xf]  ;;  %v1836_v1 = vld [vmem:[#allocation2 + $0x30] sm:$0xff]   ;;  %349 = vst.msk [vmem:[#allocation2 + $0x5c] sm:$0xf] %vm325_vm2, %v284_v62  ;;  %1701 = vmatmul.mubr.msk.bf16.gmra.mxu1 %vm621_vm3, %v1835_v49  ;;  %v1840_v5 = vld [vmem:[#allocation2 + $0x40] sm:$0xff]  }
  0x63   : > { %380 = vst.msk [vmem:[#allocation2 + $0xd8] sm:$0xf] %vm325_vm2, %v315_v63  ;;  %381 = vst.msk [vmem:[#allocation2 + $0xdc] sm:$0xf] %vm325_vm2, %v316_v0  ;;  %v1837_v2 = vld [vmem:[#allocation2 + $0xb0] sm:$0xff]   ;;  %1672 = vmatprep.mubr.msk.bf16.mxu0 %vm621_vm3, %v1836_v1  ;;  %v1838_v3 = vld [vmem:[#allocation2 + $0x38] sm:$0xff]  }
  0x64   : > { %1704 = vmatprep.mubr.msk.bf16.mxu1 %vm621_vm3, %v1837_v2  ;;  %v1839_v4 = vld [vmem:[#allocation2 + $0xb8] sm:$0xff]   ;;  %v1841_v6 = vld [vmem:[#allocation2 + $0xc0] sm:$0xff]   ;;  %v1842_v7 = vld [vmem:[#allocation2 + $0x48] sm:$0xff]  }
  0x65   : > { %v1843_v8 = vld [vmem:[#allocation2 + $0xc8] sm:$0xff]   ;;  %v285_v11 = vld [vmem:[%s2160_s24 + $0x60] sm:$0xf]  ;;  %v286_v12 = vld [vmem:[%s2160_s24 + $0x64] sm:$0xf] }
  0x66   : > { %v1844_v9 = vld [vmem:[#allocation2 + $0x50] sm:$0xff]   ;;  %v317_v13 = vld [vmem:[%s2160_s24 + $0xe0] sm:$0xf]  ;;  %350 = vst.msk [vmem:[#allocation2 + $0x60] sm:$0xf] %vm325_vm2, %v285_v11 }
  0x67   : > { %v1845_v10 = vld [vmem:[#allocation2 + $0xd0] sm:$0xff]   ;;  %351 = vst.msk [vmem:[#allocation2 + $0x64] sm:$0xf] %vm325_vm2, %v286_v12  ;;  %v318_v14 = vld [vmem:[%s2160_s24 + $0xe4] sm:$0xf] }
  0x68   : > { %382 = vst.msk [vmem:[#allocation2 + $0xe0] sm:$0xf] %vm325_vm2, %v317_v13  ;;  %v287_v15 = vld [vmem:[%s2160_s24 + $0x68] sm:$0xf]  ;;  %v288_v16 = vld [vmem:[%s2160_s24 + $0x6c] sm:$0xf] }
  0x69   : > { %1673 = vmatmul.mubr.msk.bf16.gmra.mxu0 %vm621_vm3, %v1838_v3  ;;  %383 = vst.msk [vmem:[#allocation2 + $0xe4] sm:$0xf] %vm325_vm2, %v318_v14  ;;  %352 = vst.msk [vmem:[#allocation2 + $0x68] sm:$0xf] %vm325_vm2, %v287_v15  ;;  %v319_v17 = vld [vmem:[%s2160_s24 + $0xe8] sm:$0xf] }
  0x6a   : > { %1705 = vmatmul.mubr.msk.bf16.gmra.mxu1 %vm621_vm3, %v1839_v4  ;;  %1676 = vmatprep.mubr.msk.bf16.mxu0 %vm621_vm3, %v1840_v5  ;;  %353 = vst.msk [vmem:[#allocation2 + $0x6c] sm:$0xf] %vm325_vm2, %v288_v16  ;;  %v320_v18 = vld [vmem:[%s2160_s24 + $0xec] sm:$0xf]  ;;  %v289_v19 = vld [vmem:[%s2160_s24 + $0x70] sm:$0xf] }
  0x6b   : > { %1708 = vmatprep.mubr.msk.bf16.mxu1 %vm621_vm3, %v1841_v6  ;;  %384 = vst.msk [vmem:[#allocation2 + $0xe8] sm:$0xf] %vm325_vm2, %v319_v17  ;;  %385 = vst.msk [vmem:[#allocation2 + $0xec] sm:$0xf] %vm325_vm2, %v320_v18  ;;  %v290_v20 = vld [vmem:[%s2160_s24 + $0x74] sm:$0xf] }
  0x6c   : > { %354 = vst.msk [vmem:[#allocation2 + $0x70] sm:$0xf] %vm325_vm2, %v289_v19  ;;  %v321_v21 = vld [vmem:[%s2160_s24 + $0xf0] sm:$0xf]  ;;  %v322_v22 = vld [vmem:[%s2160_s24 + $0xf4] sm:$0xf] }
  0x6d   : > { %355 = vst.msk [vmem:[#allocation2 + $0x74] sm:$0xf] %vm325_vm2, %v290_v20  ;;  %386 = vst.msk [vmem:[#allocation2 + $0xf0] sm:$0xf] %vm325_vm2, %v321_v21  ;;  %v291_v23 = vld [vmem:[%s2160_s24 + $0x78] sm:$0xf] }
  0x6e   : > { %387 = vst.msk [vmem:[#allocation2 + $0xf4] sm:$0xf] %vm325_vm2, %v322_v22  ;;  %v292_v24 = vld [vmem:[%s2160_s24 + $0x7c] sm:$0xf]  ;;  %v323_v25 = vld [vmem:[%s2160_s24 + $0xf8] sm:$0xf] }
  0x6f   : > { %356 = vst.msk [vmem:[#allocation2 + $0x78] sm:$0xf] %vm325_vm2, %v291_v23  ;;  %357 = vst.msk [vmem:[#allocation2 + $0x7c] sm:$0xf] %vm325_vm2, %v292_v24  ;;  %v324_v26 = vld [vmem:[%s2160_s24 + $0xfc] sm:$0xf] }
  0x70   : > { %388 = vst.msk [vmem:[#allocation2 + $0xf8] sm:$0xf] %vm325_vm2, %v323_v25  ;;  %389 = vst.msk [vmem:[#allocation2 + $0xfc] sm:$0xf] %vm325_vm2, %v324_v26  ;;  %v1846_v27 = vld [vmem:[#allocation2 + $0x58] sm:$0xff]   ;;  %v1848_v29 = vld [vmem:[#allocation2 + $0x60] sm:$0xff]  }
  0x71   : > { %1677 = vmatmul.mubr.msk.bf16.gmra.mxu0 %vm621_vm3, %v1842_v7  ;;  %v1847_v28 = vld [vmem:[#allocation2 + $0xd8] sm:$0xff]   ;;  %v1849_v30 = vld [vmem:[#allocation2 + $0xe0] sm:$0xff]   ;;  %v1850_v31 = vld [vmem:[#allocation2 + $0x68] sm:$0xff]   ;;  %s1914_s24 = scalar_lea.vmem %s1913_s21, 16384 }
  0x72   : > { %1709 = vmatmul.mubr.msk.bf16.gmra.mxu1 %vm621_vm3, %v1843_v8  ;;  %1680 = vmatprep.mubr.msk.bf16.mxu0 %vm621_vm3, %v1844_v9  ;;  %v1851_v32 = vld [vmem:[#allocation2 + $0xe8] sm:$0xff]   ;;  %p1916_p2 = scmp.lt.s32.totalorder %s1914_s24, %s1908_s4 }
  0x73   : > { %1712 = vmatprep.mubr.msk.bf16.mxu1 %vm621_vm3, %v1845_v10  ;;  %v2323_v37 = vld [vmem:[#allocation7] ss:$0 sm:$0xff] }
  0x74   : > { %v1852_v33 = vld [vmem:[#allocation2 + $0x70] sm:$0xff]   ;;  %p1917_p4 = por %p1916_p2, %p1915_p13 }
  0x75   : > { %v1853_v34 = vld [vmem:[#allocation2 + $0xf0] sm:$0xff]  }
  0x76   : > { %v1854_v35 = vld [vmem:[#allocation2 + $0x78] sm:$0xff]   ;;  %p1918_p5 = pnand %p1917_p4, %p1911_p11 }
  0x77   : > { %v1855_v36 = vld [vmem:[#allocation2 + $0xf8] sm:$0xff]  }
  0x79   : > { %1681 = vmatmul.mubr.msk.bf16.gmra.mxu0 %vm621_vm3, %v1846_v27 }
  0x7a   : > { %1713 = vmatmul.mubr.msk.bf16.gmra.mxu1 %vm621_vm3, %v1847_v28  ;;  %1684 = vmatprep.mubr.msk.bf16.mxu0 %vm621_vm3, %v1848_v29 }
  0x7b   : > { %1716 = vmatprep.mubr.msk.bf16.mxu1 %vm621_vm3, %v1849_v30 }
  0x81   : > { %1685 = vmatmul.mubr.msk.bf16.gmra.mxu0 %vm621_vm3, %v1850_v31 }
  0x82   : > { %1717 = vmatmul.mubr.msk.bf16.gmra.mxu1 %vm621_vm3, %v1851_v32  ;;  %1688 = vmatprep.mubr.msk.bf16.mxu0 %vm621_vm3, %v1852_v33 }
  0x83   : > { %1720 = vmatprep.mubr.msk.bf16.mxu1 %vm621_vm3, %v1853_v34 }
  0x89   : > { %1689 = vmatmul.mubr.msk.bf16.gmra.mxu0 %vm621_vm3, %v1854_v35 }
  0x8a   : > { %1721 = vmatmul.mubr.msk.bf16.gmra.mxu1 %vm621_vm3, %v1855_v36 }
 0x111   : > { %v1662_v38 = vpop.f32.mrf.mxu0 }
 0x112   : > { %v1151_v39 = vadd.f32 %v1662_v38, %v2323_v37  ;;  %v1694_v40 = vpop.f32.mrf.mxu1 }
 0x113   : > { %v1183_v41 = vadd.f32 %v1694_v40, %v2323_v37  ;;  %v759_v42 = vpop.f32.mrf.mxu0 }
 0x114   : > { %v1215_v43 = vmul.f32 0.01, %v1151_v39  ;;  %v1149_v44 = vadd.f32 %v2323_v37, %v759_v42  ;;  %v887_v45 = vpop.f32.mrf.mxu1 }
 0x115   : > { %v1247_v46 = vmul.f32 0.01, %v1183_v41  ;;  %v1181_v47 = vadd.f32 %v2323_v37, %v887_v45  ;;  %v1663_v48 = vpop.f32.mrf.mxu0 }
 0x116   : > { %v1279_v49 = vmax.f32 %v1151_v39, %v1215_v43  ;;  %v1213_v50 = vmul.f32 0.01, %v1149_v44  ;;  %v1152_v51 = vadd.f32 %v1663_v48, %v2323_v37  ;;  %v1695_v52 = vpop.f32.mrf.mxu1 }
 0x117   : > { %v1311_v53 = vmax.f32 %v1183_v41, %v1247_v46  ;;  %v1245_v54 = vmul.f32 0.01, %v1181_v47  ;;  %v1184_v55 = vadd.f32 %v1695_v52, %v2323_v37  ;;  %v762_v56 = vpop.f32.mrf.mxu0 }
 0x118   : > { %1343 = vst [vmem:[%s2333_s29 + $0x10] sm:$0xff] %v1279_v49  ;;  %v1277_v57 = vmax.f32 %v1149_v44, %v1213_v50  ;;  %v1216_v58 = vmul.f32 0.01, %v1152_v51  ;;  %v1150_v59 = vadd.f32 %v2323_v37, %v762_v56  ;;  %v890_v60 = vpop.f32.mrf.mxu1 }
 0x119   : > { %1375 = vst [vmem:[%s2333_s29 + $0x110] sm:$0xff] %v1311_v53  ;;  %v1309_v61 = vmax.f32 %v1181_v47, %v1245_v54  ;;  %v1248_v62 = vmul.f32 0.01, %v1184_v55  ;;  %v1182_v63 = vadd.f32 %v2323_v37, %v890_v60  ;;  %v1666_v0 = vpop.f32.mrf.mxu0 }
 0x11a   : > { %1341 = vst [vmem:[%s2333_s29] sm:$0xff] %v1277_v57  ;;  %v1280_v1 = vmax.f32 %v1152_v51, %v1216_v58  ;;  %v1214_v2 = vmul.f32 0.01, %v1150_v59  ;;  %v1155_v3 = vadd.f32 %v1666_v0, %v2323_v37  ;;  %v1698_v4 = vpop.f32.mrf.mxu1 }
 0x11b   : > { %1373 = vst [vmem:[%s2333_s29 + $0x100] sm:$0xff] %v1309_v61  ;;  %v1312_v5 = vmax.f32 %v1184_v55, %v1248_v62  ;;  %v1246_v6 = vmul.f32 0.01, %v1182_v63  ;;  %v1187_v7 = vadd.f32 %v1698_v4, %v2323_v37  ;;  %v775_v8 = vpop.f32.mrf.mxu0 }
 0x11c   : > { %1344 = vst [vmem:[%s2333_s29 + $0x18] sm:$0xff] %v1280_v1  ;;  %v1278_v9 = vmax.f32 %v1150_v59, %v1214_v2  ;;  %v1219_v10 = vmul.f32 0.01, %v1155_v3  ;;  %v1153_v11 = vadd.f32 %v2323_v37, %v775_v8  ;;  %v903_v12 = vpop.f32.mrf.mxu1 }
 0x11d   : > { %1376 = vst [vmem:[%s2333_s29 + $0x118] sm:$0xff] %v1312_v5  ;;  %v1310_v13 = vmax.f32 %v1182_v63, %v1246_v6  ;;  %v1251_v14 = vmul.f32 0.01, %v1187_v7  ;;  %v1185_v15 = vadd.f32 %v2323_v37, %v903_v12  ;;  %v1667_v16 = vpop.f32.mrf.mxu0 }
 0x11e   : > { %1342 = vst [vmem:[%s2333_s29 + $0x8] sm:$0xff] %v1278_v9  ;;  %v1283_v17 = vmax.f32 %v1155_v3, %v1219_v10  ;;  %v1217_v18 = vmul.f32 0.01, %v1153_v11  ;;  %v1156_v19 = vadd.f32 %v1667_v16, %v2323_v37  ;;  %v1699_v20 = vpop.f32.mrf.mxu1 }
 0x11f   : > { %1374 = vst [vmem:[%s2333_s29 + $0x108] sm:$0xff] %v1310_v13  ;;  %v1315_v21 = vmax.f32 %v1187_v7, %v1251_v14  ;;  %v1249_v22 = vmul.f32 0.01, %v1185_v15  ;;  %v1188_v23 = vadd.f32 %v1699_v20, %v2323_v37  ;;  %v778_v24 = vpop.f32.mrf.mxu0 }
 0x120   : > { %1347 = vst [vmem:[%s2333_s29 + $0x30] sm:$0xff] %v1283_v17  ;;  %v1281_v25 = vmax.f32 %v1153_v11, %v1217_v18  ;;  %v1220_v26 = vmul.f32 0.01, %v1156_v19  ;;  %v1154_v27 = vadd.f32 %v2323_v37, %v778_v24  ;;  %v906_v28 = vpop.f32.mrf.mxu1 }
 0x121   : > { %1379 = vst [vmem:[%s2333_s29 + $0x130] sm:$0xff] %v1315_v21  ;;  %v1313_v29 = vmax.f32 %v1185_v15, %v1249_v22  ;;  %v1252_v30 = vmul.f32 0.01, %v1188_v23  ;;  %v1186_v31 = vadd.f32 %v2323_v37, %v906_v28  ;;  %v1670_v32 = vpop.f32.mrf.mxu0 }
 0x122   : > { %1345 = vst [vmem:[%s2333_s29 + $0x20] sm:$0xff] %v1281_v25  ;;  %v1284_v33 = vmax.f32 %v1156_v19, %v1220_v26  ;;  %v1218_v34 = vmul.f32 0.01, %v1154_v27  ;;  %v1159_v35 = vadd.f32 %v1670_v32, %v2323_v37  ;;  %v1702_v36 = vpop.f32.mrf.mxu1 }
 0x123   : > { %1377 = vst [vmem:[%s2333_s29 + $0x120] sm:$0xff] %v1313_v29  ;;  %v1316_v38 = vmax.f32 %v1188_v23, %v1252_v30  ;;  %v1250_v39 = vmul.f32 0.01, %v1186_v31  ;;  %v1191_v40 = vadd.f32 %v1702_v36, %v2323_v37  ;;  %v791_v41 = vpop.f32.mrf.mxu0 }
 0x124   : > { %1348 = vst [vmem:[%s2333_s29 + $0x38] sm:$0xff] %v1284_v33  ;;  %v1282_v42 = vmax.f32 %v1154_v27, %v1218_v34  ;;  %v1223_v43 = vmul.f32 0.01, %v1159_v35  ;;  %v1157_v44 = vadd.f32 %v2323_v37, %v791_v41  ;;  %v919_v45 = vpop.f32.mrf.mxu1 }
 0x125   : > { %1380 = vst [vmem:[%s2333_s29 + $0x138] sm:$0xff] %v1316_v38  ;;  %v1314_v46 = vmax.f32 %v1186_v31, %v1250_v39  ;;  %v1255_v47 = vmul.f32 0.01, %v1191_v40  ;;  %v1189_v48 = vadd.f32 %v2323_v37, %v919_v45  ;;  %v1671_v49 = vpop.f32.mrf.mxu0 }
 0x126   : > { %1346 = vst [vmem:[%s2333_s29 + $0x28] sm:$0xff] %v1282_v42  ;;  %v1287_v50 = vmax.f32 %v1159_v35, %v1223_v43  ;;  %v1221_v51 = vmul.f32 0.01, %v1157_v44  ;;  %v1160_v52 = vadd.f32 %v1671_v49, %v2323_v37  ;;  %v1703_v53 = vpop.f32.mrf.mxu1 }
 0x127   : > { %1378 = vst [vmem:[%s2333_s29 + $0x128] sm:$0xff] %v1314_v46  ;;  %v1319_v54 = vmax.f32 %v1191_v40, %v1255_v47  ;;  %v1253_v55 = vmul.f32 0.01, %v1189_v48  ;;  %v1192_v56 = vadd.f32 %v1703_v53, %v2323_v37  ;;  %v794_v57 = vpop.f32.mrf.mxu0 }
 0x128   : > { %1351 = vst [vmem:[%s2333_s29 + $0x50] sm:$0xff] %v1287_v50  ;;  %v1285_v58 = vmax.f32 %v1157_v44, %v1221_v51  ;;  %v1224_v59 = vmul.f32 0.01, %v1160_v52  ;;  %v1158_v60 = vadd.f32 %v2323_v37, %v794_v57  ;;  %v922_v61 = vpop.f32.mrf.mxu1 }
 0x129   : > { %1383 = vst [vmem:[%s2333_s29 + $0x150] sm:$0xff] %v1319_v54  ;;  %v1317_v62 = vmax.f32 %v1189_v48, %v1253_v55  ;;  %v1256_v63 = vmul.f32 0.01, %v1192_v56  ;;  %v1190_v0 = vadd.f32 %v2323_v37, %v922_v61  ;;  %v1674_v1 = vpop.f32.mrf.mxu0 }
 0x12a   : > { %1349 = vst [vmem:[%s2333_s29 + $0x40] sm:$0xff] %v1285_v58  ;;  %v1288_v2 = vmax.f32 %v1160_v52, %v1224_v59  ;;  %v1222_v3 = vmul.f32 0.01, %v1158_v60  ;;  %v1163_v4 = vadd.f32 %v1674_v1, %v2323_v37  ;;  %v1706_v5 = vpop.f32.mrf.mxu1 }
 0x12b   : > { %1381 = vst [vmem:[%s2333_s29 + $0x140] sm:$0xff] %v1317_v62  ;;  %v1320_v6 = vmax.f32 %v1192_v56, %v1256_v63  ;;  %v1254_v7 = vmul.f32 0.01, %v1190_v0  ;;  %v1195_v8 = vadd.f32 %v1706_v5, %v2323_v37  ;;  %v807_v9 = vpop.f32.mrf.mxu0 }
 0x12c   : > { %1352 = vst [vmem:[%s2333_s29 + $0x58] sm:$0xff] %v1288_v2  ;;  %v1286_v10 = vmax.f32 %v1158_v60, %v1222_v3  ;;  %v1227_v11 = vmul.f32 0.01, %v1163_v4  ;;  %v1161_v12 = vadd.f32 %v2323_v37, %v807_v9  ;;  %v935_v13 = vpop.f32.mrf.mxu1 }
 0x12d   : > { %1384 = vst [vmem:[%s2333_s29 + $0x158] sm:$0xff] %v1320_v6  ;;  %v1318_v14 = vmax.f32 %v1190_v0, %v1254_v7  ;;  %v1259_v15 = vmul.f32 0.01, %v1195_v8  ;;  %v1193_v16 = vadd.f32 %v2323_v37, %v935_v13  ;;  %v1675_v17 = vpop.f32.mrf.mxu0 }
 0x12e   : > { %1350 = vst [vmem:[%s2333_s29 + $0x48] sm:$0xff] %v1286_v10  ;;  %v1291_v18 = vmax.f32 %v1163_v4, %v1227_v11  ;;  %v1225_v19 = vmul.f32 0.01, %v1161_v12  ;;  %v1164_v20 = vadd.f32 %v1675_v17, %v2323_v37  ;;  %v1707_v21 = vpop.f32.mrf.mxu1 }
 0x12f   : > { %1382 = vst [vmem:[%s2333_s29 + $0x148] sm:$0xff] %v1318_v14  ;;  %v1323_v22 = vmax.f32 %v1195_v8, %v1259_v15  ;;  %v1257_v23 = vmul.f32 0.01, %v1193_v16  ;;  %v1196_v24 = vadd.f32 %v1707_v21, %v2323_v37  ;;  %v810_v25 = vpop.f32.mrf.mxu0 }
 0x130   : > { %1355 = vst [vmem:[%s2333_s29 + $0x70] sm:$0xff] %v1291_v18  ;;  %v1289_v26 = vmax.f32 %v1161_v12, %v1225_v19  ;;  %v1228_v27 = vmul.f32 0.01, %v1164_v20  ;;  %v1162_v28 = vadd.f32 %v2323_v37, %v810_v25  ;;  %v938_v29 = vpop.f32.mrf.mxu1 }
 0x131   : > { %1387 = vst [vmem:[%s2333_s29 + $0x170] sm:$0xff] %v1323_v22  ;;  %v1321_v30 = vmax.f32 %v1193_v16, %v1257_v23  ;;  %v1260_v31 = vmul.f32 0.01, %v1196_v24  ;;  %v1194_v32 = vadd.f32 %v2323_v37, %v938_v29  ;;  %v1678_v33 = vpop.f32.mrf.mxu0 }
 0x132   : > { %1353 = vst [vmem:[%s2333_s29 + $0x60] sm:$0xff] %v1289_v26  ;;  %v1292_v34 = vmax.f32 %v1164_v20, %v1228_v27  ;;  %v1226_v35 = vmul.f32 0.01, %v1162_v28  ;;  %v1167_v36 = vadd.f32 %v1678_v33, %v2323_v37  ;;  %v1710_v38 = vpop.f32.mrf.mxu1 }
 0x133   : > { %1385 = vst [vmem:[%s2333_s29 + $0x160] sm:$0xff] %v1321_v30  ;;  %v1324_v39 = vmax.f32 %v1196_v24, %v1260_v31  ;;  %v1258_v40 = vmul.f32 0.01, %v1194_v32  ;;  %v1199_v41 = vadd.f32 %v1710_v38, %v2323_v37  ;;  %v823_v42 = vpop.f32.mrf.mxu0 }
 0x134   : > { %1356 = vst [vmem:[%s2333_s29 + $0x78] sm:$0xff] %v1292_v34  ;;  %v1290_v43 = vmax.f32 %v1162_v28, %v1226_v35  ;;  %v1231_v44 = vmul.f32 0.01, %v1167_v36  ;;  %v1165_v45 = vadd.f32 %v2323_v37, %v823_v42  ;;  %v951_v46 = vpop.f32.mrf.mxu1 }
 0x135   : > { %1388 = vst [vmem:[%s2333_s29 + $0x178] sm:$0xff] %v1324_v39  ;;  %v1322_v47 = vmax.f32 %v1194_v32, %v1258_v40  ;;  %v1263_v48 = vmul.f32 0.01, %v1199_v41  ;;  %v1197_v49 = vadd.f32 %v2323_v37, %v951_v46  ;;  %v1679_v50 = vpop.f32.mrf.mxu0 }
 0x136   : > { %1354 = vst [vmem:[%s2333_s29 + $0x68] sm:$0xff] %v1290_v43  ;;  %v1295_v51 = vmax.f32 %v1167_v36, %v1231_v44  ;;  %v1229_v52 = vmul.f32 0.01, %v1165_v45  ;;  %v1168_v53 = vadd.f32 %v1679_v50, %v2323_v37  ;;  %v1711_v54 = vpop.f32.mrf.mxu1 }
 0x137   : > { %1386 = vst [vmem:[%s2333_s29 + $0x168] sm:$0xff] %v1322_v47  ;;  %v1327_v55 = vmax.f32 %v1199_v41, %v1263_v48  ;;  %v1261_v56 = vmul.f32 0.01, %v1197_v49  ;;  %v1200_v57 = vadd.f32 %v1711_v54, %v2323_v37  ;;  %v826_v58 = vpop.f32.mrf.mxu0 }
 0x138   : > { %1359 = vst [vmem:[%s2333_s29 + $0x90] sm:$0xff] %v1295_v51  ;;  %v1293_v59 = vmax.f32 %v1165_v45, %v1229_v52  ;;  %v1232_v60 = vmul.f32 0.01, %v1168_v53  ;;  %v1166_v61 = vadd.f32 %v2323_v37, %v826_v58  ;;  %v954_v62 = vpop.f32.mrf.mxu1 }
 0x139   : > { %1391 = vst [vmem:[%s2333_s29 + $0x190] sm:$0xff] %v1327_v55  ;;  %v1325_v63 = vmax.f32 %v1197_v49, %v1261_v56  ;;  %v1264_v0 = vmul.f32 0.01, %v1200_v57  ;;  %v1198_v1 = vadd.f32 %v2323_v37, %v954_v62  ;;  %v1682_v2 = vpop.f32.mrf.mxu0 }
 0x13a   : > { %1357 = vst [vmem:[%s2333_s29 + $0x80] sm:$0xff] %v1293_v59  ;;  %v1296_v3 = vmax.f32 %v1168_v53, %v1232_v60  ;;  %v1230_v4 = vmul.f32 0.01, %v1166_v61  ;;  %v1171_v5 = vadd.f32 %v1682_v2, %v2323_v37  ;;  %v1714_v6 = vpop.f32.mrf.mxu1 }
 0x13b   : > { %1389 = vst [vmem:[%s2333_s29 + $0x180] sm:$0xff] %v1325_v63  ;;  %v1328_v7 = vmax.f32 %v1200_v57, %v1264_v0  ;;  %v1262_v8 = vmul.f32 0.01, %v1198_v1  ;;  %v1203_v9 = vadd.f32 %v1714_v6, %v2323_v37  ;;  %v839_v10 = vpop.f32.mrf.mxu0 }
 0x13c   : > { %1360 = vst [vmem:[%s2333_s29 + $0x98] sm:$0xff] %v1296_v3  ;;  %v1294_v11 = vmax.f32 %v1166_v61, %v1230_v4  ;;  %v1235_v12 = vmul.f32 0.01, %v1171_v5  ;;  %v1169_v13 = vadd.f32 %v2323_v37, %v839_v10  ;;  %v967_v14 = vpop.f32.mrf.mxu1 }
 0x13d   : > { %1392 = vst [vmem:[%s2333_s29 + $0x198] sm:$0xff] %v1328_v7  ;;  %v1326_v15 = vmax.f32 %v1198_v1, %v1262_v8  ;;  %v1267_v16 = vmul.f32 0.01, %v1203_v9  ;;  %v1201_v17 = vadd.f32 %v2323_v37, %v967_v14  ;;  %v1683_v18 = vpop.f32.mrf.mxu0 }
 0x13e   : > { %1358 = vst [vmem:[%s2333_s29 + $0x88] sm:$0xff] %v1294_v11  ;;  %v1299_v19 = vmax.f32 %v1171_v5, %v1235_v12  ;;  %v1233_v20 = vmul.f32 0.01, %v1169_v13  ;;  %v1172_v21 = vadd.f32 %v1683_v18, %v2323_v37  ;;  %v1715_v22 = vpop.f32.mrf.mxu1 }
 0x13f   : > { %1390 = vst [vmem:[%s2333_s29 + $0x188] sm:$0xff] %v1326_v15  ;;  %v1331_v23 = vmax.f32 %v1203_v9, %v1267_v16  ;;  %v1265_v24 = vmul.f32 0.01, %v1201_v17  ;;  %v1204_v25 = vadd.f32 %v1715_v22, %v2323_v37  ;;  %v842_v26 = vpop.f32.mrf.mxu0 }
 0x140   : > { %1363 = vst [vmem:[%s2333_s29 + $0xb0] sm:$0xff] %v1299_v19  ;;  %v1297_v27 = vmax.f32 %v1169_v13, %v1233_v20  ;;  %v1236_v28 = vmul.f32 0.01, %v1172_v21  ;;  %v1170_v29 = vadd.f32 %v2323_v37, %v842_v26  ;;  %v970_v30 = vpop.f32.mrf.mxu1 }
 0x141   : > { %1395 = vst [vmem:[%s2333_s29 + $0x1b0] sm:$0xff] %v1331_v23  ;;  %v1329_v31 = vmax.f32 %v1201_v17, %v1265_v24  ;;  %v1268_v32 = vmul.f32 0.01, %v1204_v25  ;;  %v1202_v33 = vadd.f32 %v2323_v37, %v970_v30  ;;  %v1686_v34 = vpop.f32.mrf.mxu0 }
 0x142   : > { %1361 = vst [vmem:[%s2333_s29 + $0xa0] sm:$0xff] %v1297_v27  ;;  %v1300_v35 = vmax.f32 %v1172_v21, %v1236_v28  ;;  %v1234_v36 = vmul.f32 0.01, %v1170_v29  ;;  %v1175_v38 = vadd.f32 %v1686_v34, %v2323_v37  ;;  %v1718_v39 = vpop.f32.mrf.mxu1 }
 0x143   : > { %1393 = vst [vmem:[%s2333_s29 + $0x1a0] sm:$0xff] %v1329_v31  ;;  %v1332_v40 = vmax.f32 %v1204_v25, %v1268_v32  ;;  %v1266_v41 = vmul.f32 0.01, %v1202_v33  ;;  %v1207_v42 = vadd.f32 %v1718_v39, %v2323_v37  ;;  %v855_v43 = vpop.f32.mrf.mxu0 }
 0x144   : > { %1364 = vst [vmem:[%s2333_s29 + $0xb8] sm:$0xff] %v1300_v35  ;;  %v1298_v44 = vmax.f32 %v1170_v29, %v1234_v36  ;;  %v1239_v45 = vmul.f32 0.01, %v1175_v38  ;;  %v1173_v46 = vadd.f32 %v2323_v37, %v855_v43  ;;  %v983_v47 = vpop.f32.mrf.mxu1 }
 0x145   : > { %1396 = vst [vmem:[%s2333_s29 + $0x1b8] sm:$0xff] %v1332_v40  ;;  %v1330_v48 = vmax.f32 %v1202_v33, %v1266_v41  ;;  %v1271_v49 = vmul.f32 0.01, %v1207_v42  ;;  %v1205_v50 = vadd.f32 %v2323_v37, %v983_v47  ;;  %v1687_v51 = vpop.f32.mrf.mxu0 }
 0x146   : > { %1362 = vst [vmem:[%s2333_s29 + $0xa8] sm:$0xff] %v1298_v44  ;;  %v1303_v52 = vmax.f32 %v1175_v38, %v1239_v45  ;;  %v1237_v53 = vmul.f32 0.01, %v1173_v46  ;;  %v1176_v54 = vadd.f32 %v1687_v51, %v2323_v37  ;;  %v1719_v55 = vpop.f32.mrf.mxu1 }
 0x147   : > { %1394 = vst [vmem:[%s2333_s29 + $0x1a8] sm:$0xff] %v1330_v48  ;;  %v1335_v56 = vmax.f32 %v1207_v42, %v1271_v49  ;;  %v1269_v57 = vmul.f32 0.01, %v1205_v50  ;;  %v1208_v58 = vadd.f32 %v1719_v55, %v2323_v37  ;;  %v858_v59 = vpop.f32.mrf.mxu0 }
 0x148   : > { %1367 = vst [vmem:[%s2333_s29 + $0xd0] sm:$0xff] %v1303_v52  ;;  %v1301_v60 = vmax.f32 %v1173_v46, %v1237_v53  ;;  %v1240_v61 = vmul.f32 0.01, %v1176_v54  ;;  %v1174_v62 = vadd.f32 %v2323_v37, %v858_v59  ;;  %v986_v63 = vpop.f32.mrf.mxu1 }
 0x149   : > { %1399 = vst [vmem:[%s2333_s29 + $0x1d0] sm:$0xff] %v1335_v56  ;;  %v1333_v0 = vmax.f32 %v1205_v50, %v1269_v57  ;;  %v1272_v1 = vmul.f32 0.01, %v1208_v58  ;;  %v1206_v2 = vadd.f32 %v2323_v37, %v986_v63  ;;  %v1690_v3 = vpop.f32.mrf.mxu0 }
 0x14a   : > { %1365 = vst [vmem:[%s2333_s29 + $0xc0] sm:$0xff] %v1301_v60  ;;  %v1304_v4 = vmax.f32 %v1176_v54, %v1240_v61  ;;  %v1238_v5 = vmul.f32 0.01, %v1174_v62  ;;  %v1179_v6 = vadd.f32 %v1690_v3, %v2323_v37  ;;  %v1722_v7 = vpop.f32.mrf.mxu1 }
 0x14b   : > { %1397 = vst [vmem:[%s2333_s29 + $0x1c0] sm:$0xff] %v1333_v0  ;;  %v1336_v8 = vmax.f32 %v1208_v58, %v1272_v1  ;;  %v1270_v9 = vmul.f32 0.01, %v1206_v2  ;;  %v1211_v10 = vadd.f32 %v1722_v7, %v2323_v37  ;;  %v871_v11 = vpop.f32.mrf.mxu0 }
 0x14c   : > { %1368 = vst [vmem:[%s2333_s29 + $0xd8] sm:$0xff] %v1304_v4  ;;  %v1302_v12 = vmax.f32 %v1174_v62, %v1238_v5  ;;  %v1243_v13 = vmul.f32 0.01, %v1179_v6  ;;  %v1177_v14 = vadd.f32 %v2323_v37, %v871_v11  ;;  %v999_v15 = vpop.f32.mrf.mxu1 }
 0x14d   : > { %1400 = vst [vmem:[%s2333_s29 + $0x1d8] sm:$0xff] %v1336_v8  ;;  %v1334_v16 = vmax.f32 %v1206_v2, %v1270_v9  ;;  %v1275_v17 = vmul.f32 0.01, %v1211_v10  ;;  %v1209_v18 = vadd.f32 %v2323_v37, %v999_v15  ;;  %v1691_v19 = vpop.f32.mrf.mxu0 }
 0x14e   : > { %1366 = vst [vmem:[%s2333_s29 + $0xc8] sm:$0xff] %v1302_v12  ;;  %v1307_v20 = vmax.f32 %v1179_v6, %v1243_v13  ;;  %v1241_v21 = vmul.f32 0.01, %v1177_v14  ;;  %v1180_v22 = vadd.f32 %v1691_v19, %v2323_v37  ;;  %v1723_v23 = vpop.f32.mrf.mxu1 }
 0x14f   : > { %1398 = vst [vmem:[%s2333_s29 + $0x1c8] sm:$0xff] %v1334_v16  ;;  %v1339_v24 = vmax.f32 %v1211_v10, %v1275_v17  ;;  %v1273_v25 = vmul.f32 0.01, %v1209_v18  ;;  %v1212_v26 = vadd.f32 %v1723_v23, %v2323_v37  ;;  %v874_v27 = vpop.f32.mrf.mxu0 }
 0x150   : > { %1371 = vst [vmem:[%s2333_s29 + $0xf0] sm:$0xff] %v1307_v20  ;;  %v1305_v28 = vmax.f32 %v1177_v14, %v1241_v21  ;;  %v1244_v29 = vmul.f32 0.01, %v1180_v22  ;;  %v1178_v30 = vadd.f32 %v2323_v37, %v874_v27  ;;  %v1002_v31 = vpop.f32.mrf.mxu1 }
 0x151   : > { %1403 = vst [vmem:[%s2333_s29 + $0x1f0] sm:$0xff] %v1339_v24  ;;  %v1337_v32 = vmax.f32 %v1209_v18, %v1273_v25  ;;  %v1276_v33 = vmul.f32 0.01, %v1212_v26  ;;  %v1210_v34 = vadd.f32 %v2323_v37, %v1002_v31 }
 0x152   : > { %1369 = vst [vmem:[%s2333_s29 + $0xe0] sm:$0xff] %v1305_v28  ;;  %v1308_v35 = vmax.f32 %v1180_v22, %v1244_v29  ;;  %v1242_v36 = vmul.f32 0.01, %v1178_v30 }
 0x153   : > { %1401 = vst [vmem:[%s2333_s29 + $0x1e0] sm:$0xff] %v1337_v32  ;;  %v1340_v38 = vmax.f32 %v1212_v26, %v1276_v33  ;;  %v1274_v39 = vmul.f32 0.01, %v1210_v34 }
 0x154   : > { %1372 = vst [vmem:[%s2333_s29 + $0xf8] sm:$0xff] %v1308_v35  ;;  %v1306_v40 = vmax.f32 %v1178_v30, %v1242_v36 }
 0x155   : > { %1404 = vst [vmem:[%s2333_s29 + $0x1f8] sm:$0xff] %v1340_v38  ;;  %v1338_v37 = vmax.f32 %v1210_v34, %v1274_v39 }
 0x156   : > { %1370 = vst [vmem:[%s2333_s29 + $0xe8] sm:$0xff] %v1306_v40 }
 0x157   : > { %1402 = vst [vmem:[%s2333_s29 + $0x1e8] sm:$0xff] %v1338_v37 }
 0x158   : > { %1921 = shalt.err (!%p1918_p5)
}
 0x159   : > { %s1922_s25 = scalar_lea.hbm %s2460_s10, 8192  ;;  %s1926_s6 = scalar_lea.hbm %s2523_s3, 65536 }
 0x15a   : > { %p1923_p6 = scmp.ne.s32.totalorder %s2460_s10, %s1922_s25  ;;  %p1927_p0 = scmp.lt.s32.totalorder %s2460_s10, %s2523_s3 }
 0x15b   : > { %p1928_p1 = scmp.lt.s32.totalorder %s1926_s6, %s1922_s25 }
 0x15c   : > { %p1924_p7 = pnand %p1923_p6, %p2090_p3 }
 0x15d   : > { %p1929_p10 = por %p1928_p1, %p1927_p0 }
 0x15e   : > { %p1925_p9 = pneg %p1924_p7 }
 0x160   : > { %p1930_p12 = pnand %p1929_p10, %p1925_p9 }
 0x162   : > { %1933 = shalt.err (!%p1930_p12)
}
 0x163   : > { %s2016_s16 = smov 128   ;;  %s2017_s7 = smov 8  }
 0x164   : > { %1734 = dma.vmem_to_hbm [thread:$0]  (%p2090_p3), %s2462_s30, 8192, %s2460_s10, %s2469_s11, %s2016_s16, %s2016_s16, %s2017_s7  }
 0x165 PF: > { %p1751_p11 = scmp.ge.s32.totalorder %s2008_s19, 2  ;;  %s1437_s8 = sand.u32 1, %s1980_s12  }
 0x166   : > { %s1438_s4 = scalar_lea.sflag [#allocation6], %s1437_s8 }
 0x167   : > { %p1744_p13 = pnand %p1751_p11, %p2099_p8 }
 0x169   : > { %p1745_p2 = pneg %p1744_p13 }
 0x16b   : > { %1975 = dma.done.wait (%p1745_p2), %s1438_s4, 8192  }
 0x16c   : > { %1977 = vsyncadd (%p1745_p2), %s1438_s4, 4294959104  ;;  %s18_s19 = sadd.s32 1, %s2008_s19   ;;  %s2529_s12 = smov %s1984_s13 }
 0x16d   : > { %p15_p4 = scmp.ge.s32.totalorder %s18_s19, 10   ;;  %s2530_s13 = smov %s1988_s14 }
 0x16e   : > { %s2531_s14 = smov %s2117_s5  ;;  %s2532_s15 = smov %s2000_s17 }
 0x16f   : > { %s2533_s16 = smov %s2004_s18  ;;  %s2534_s17 = smov %s2537_s22 }
 0x170   : > { %s2535_s18 = smov %s2541_s23  ;;  %17 = sbr.rel (!%p15_p4) target bundleno = 7 (0x7), region = 78 }
 0x175   :  { %1443 = vsyncpa [#allocation5], 1 }
 0x176   :  { %1445 = vsyncpa [#allocation5 + $0x1], 1 }
 0x177   :  { %1446 = vsyncpa [#allocation8], 1 }
 0x178   :  { %1447 = vsyncpa [#allocation6], 1 }
 0x179   :  { %1449 = vsyncpa [#allocation6 + $0x1], 1 }

</bundles_post_ra>
